<compile_context>
chip_gen: v6e
topology: v6e:2x2x1
jax: 0.10.0
libtpu: 0.0.40
codegen_flags: <defaults>
</compile_context>

<pallas_src>
import math

import jax
import jax.numpy as jnp
from jax.experimental import pallas as pl
from jax.experimental.pallas import tpu as pltpu


def _rescale_kernel(w_ref, x_ref, o_ref):
    # w_ref: (1, tf) weight tile; x_ref / o_ref: (tb, tf) tile.
    # Single VPU broadcast-multiply; DMA is the binding resource, so the body
    # stays minimal (no MXU, no scratch).
    o_ref[...] = (x_ref[...] * w_ref[...]).astype(o_ref.dtype)


def _largest_divisor_leq(n: int, cap: int) -> int:
    """Largest divisor of n that is <= cap (always >= 1)."""
    cap = max(1, min(cap, n))
    best, d = 1, 1
    while d * d <= n:
        if n % d == 0:
            if d <= cap:
                best = max(best, d)
            q = n // d
            if q <= cap:
                best = max(best, q)
        d += 1
    return best


def _chip_profile():
    """Per-generation tiling policy (target tile bytes, scoped VMEM, caps)."""
    kind = ""
    try:
        kind = jax.devices()[0].device_kind.lower()
    except Exception:  # pragma: no cover - defensive; fall through to default
        pass
    if "v7" in kind:
        # 3.2 TB/s HBM -> bigger tiles to amortize per-step overhead;
        # only 64 MiB physical VMEM, so cap the explicit limit well below it.
        return {"target": 4 << 20, "scoped": 32 << 20, "cap": 48 << 20, "dual_tc": True}
    if "v5" in kind:
        # v5e default scoped VMEM is 16 MiB; 2 MiB tiles already fully amortize
        # overhead at ~820 GB/s, and 4x2 MiB of double-buffered tiles fits.
        return {"target": 2 << 20, "scoped": 16 << 20, "cap": 96 << 20, "dual_tc": False}
    # v6e (and unknown chips): 2 MiB tiles sit ~85% of the HBM roofline.
    return {"target": 2 << 20, "scoped": 32 << 20, "cap": 96 << 20, "dual_tc": False}


def rescale(x: jax.Array, weight: jax.Array, *, target_tile_bytes: int | None = None) -> jax.Array:
    """Pallas equivalent of `Rescale.forward`: y = weight * x.

    x: (B, F), weight: (1, F). Returns (B, F) with x's dtype.
    """
    B, F = x.shape
    assert weight.shape == (1, F), (weight.shape, F)

    prof = _chip_profile()
    if target_tile_bytes is None:
        target_tile_bytes = prof["target"]

    # Keep the multiply in x.dtype: a wider weight (f32 vs bf16 x) would
    # otherwise promote every x vreg to f32 (2x vreg pressure + converts).
    # TODO(synk): PyTorch type promotion would make the output the wider of
    # (weight.dtype, x.dtype); here the output dtype is pinned to x.dtype.
    weight = weight.astype(x.dtype)

    itemsize = x.dtype.itemsize
    sub = max(8, 32 // itemsize)  # sublane multiple: 8 f32, 16 bf16, 32 int8/fp8

    # --- Lane-dense last dim -------------------------------------------------
    pad = 0
    k = 1
    if F % 128 == 0:
        Bp, Fp = B, F
        x_p, w_p = x, weight
    else:
        k_needed = 128 // math.gcd(F, 128)
        if B % k_needed == 0:
            # Fold k consecutive rows into the lane axis (row-major reshape keeps
            # per-row feature order; tiling the weight k times keeps y bit-exact).
            k = k_needed
            Bp, Fp = B // k, k * F
            x_p = x.reshape(Bp, Fp)
            w_p = jnp.tile(weight, (1, k))
        else:
            # Can't fold: zero-pad F to the next 128 multiple so stores stay
            # unmasked; the pad lanes are sliced off after the call.
            Fp = ((F + 127) // 128) * 128
            pad = Fp - F
            Bp = B
            x_p = jnp.pad(x, ((0, 0), (0, pad)))
            w_p = jnp.pad(weight, ((0, 0), (0, pad)))

    # --- Feature-axis tiling (wide-F safety) ---------------------------------
    # If even a minimal-sublane tile of a full row would blow the budget, tile
    # the feature axis with a 128-multiple that divides Fp (no ragged F tiles).
    row_bytes = Fp * itemsize
    if row_bytes * sub > target_tile_bytes:
        units = max(1, target_tile_bytes // (itemsize * 128 * sub))
        units = _largest_divisor_leq(Fp // 128, units)
        tf = units * 128
    else:
        tf = Fp
    grid_f = Fp // tf

    # --- Batch tiling ---------------------------------------------------------
    tile_row_bytes = tf * itemsize
    rows_target = max(sub, (target_tile_bytes // tile_row_bytes) // sub * sub)

    # Never collapse to a single grid step for non-tiny inputs: force >= 4
    # total grid steps when the array is > 512 KiB so DMA-in / compute /
    # DMA-out actually overlap (and v7x's second TC has work).
    total_bytes = Bp * Fp * itemsize
    min_steps = 4 if total_bytes > (512 << 10) else 1
    min_grid_b = max(1, -(-min_steps // grid_f))

    if Bp <= sub:
        tb = Bp                                   # full (tiny) batch dim in one block
    elif rows_target >= Bp and min_grid_b <= 1:
        tb = Bp                                   # small input: one tile is fine
    else:
        tb_cap = Bp if min_grid_b <= 1 else max(sub, (Bp // min_grid_b) // sub * sub)
        tb = max(sub, min(rows_target, tb_cap, (Bp // sub) * sub))
        # Prefer a tb that divides Bp so the last tile isn't ragged.
        div = _largest_divisor_leq(Bp, tb)
        if div >= sub and div % sub == 0:
            tb = div
    grid_b = pl.cdiv(Bp, tb)

    # Dual-TC chips (v7x): nudge the grid to an even length so the "parallel"
    # batch axis splits evenly across the two TensorCores.
    if prof["dual_tc"] and grid_b > 1 and grid_b % 2 == 1 and tb > sub:
        for cand in range(tb - sub, max(sub - 1, tb - 9 * sub), -sub):
            if cand >= sub and pl.cdiv(Bp, cand) % 2 == 0:
                tb, grid_b = cand, pl.cdiv(Bp, cand)
                break

    # Real VMEM footprint: double-buffered x tile + double-buffered out tile +
    # the (tiny, double-buffered) weight tile.
    footprint = 4 * tb * tf * itemsize + 2 * tf * itemsize
    vmem_limit = int(min(max(prof["scoped"], footprint + (2 << 20)), prof["cap"]))

    out_p = pl.pallas_call(
        _rescale_kernel,
        out_shape=jax.ShapeDtypeStruct((Bp, Fp), x.dtype),
        grid_spec=pltpu.PrefetchScalarGridSpec(
            num_scalar_prefetch=0,
            grid=(grid_b, grid_f),
            in_specs=[
                # Weight: indexed only by the feature axis (resident across batch tiles).
                pl.BlockSpec((1, tf), lambda i, j: (0, j)),
                # x: one (batch, feature) tile per grid step (auto double-buffered).
                pl.BlockSpec((tb, tf), lambda i, j: (i, j)),
            ],
            out_specs=pl.BlockSpec((tb, tf), lambda i, j: (i, j)),
        ),
        compiler_params=pltpu.CompilerParams(
            # All tiles independent: lets v7x shard over its 2 TCs, free elsewhere.
            dimension_semantics=("parallel", "parallel"),
            vmem_limit_bytes=vmem_limit,
        ),
    )(w_p, x_p)

    if k > 1:
        return out_p.reshape(B, F)
    if pad:
        return out_p[:, :F]
    return out_p


if __name__ == "__main__":
    key = jax.random.PRNGKey(0)
    k1, k2, k3, k4 = jax.random.split(key, 4)

    # Case 1: small (batch, num_features); F=32 exercises the row-fold packing
    # path (8 rows of 32 -> 2 lane-dense rows of 128).
    B, F = 8, 32
    x = jax.random.normal(k1, (B, F), dtype=jnp.float32)
    weight = jnp.ones((1, F), dtype=jnp.float32)        # module init: ones(1, F)
    y = rescale(x, weight)
    jax.block_until_ready(y)
    assert y.shape == x.shape
    assert jnp.allclose(y, weight * x, atol=1e-6, rtol=1e-6)

    # Case 1b: non-trivial weights on the packed path (verifies the
    # reshape/tile bookkeeping, not just the ones init).
    w1b = jax.random.normal(k3, (1, F), dtype=jnp.float32)
    y1b = rescale(x, w1b)
    jax.block_until_ready(y1b)
    assert jnp.allclose(y1b, w1b * x, atol=1e-6, rtol=1e-6)

    # Case 2: multi-tile batch grid with a ragged last tile (tiny forced tile
    # size -> tb=8, grid_b=3). Still small shapes.
    B2, F2 = 20, 256
    x2 = jax.random.normal(k2, (B2, F2), dtype=jnp.float32)
    w2 = jnp.linspace(0.5, 1.5, F2, dtype=jnp.float32).reshape(1, F2)
    y2 = rescale(x2, w2, target_tile_bytes=8 * F2 * 4)
    jax.block_until_ready(y2)
    assert y2.shape == x2.shape
    assert jnp.allclose(y2, w2 * x2, atol=1e-6, rtol=1e-6)

    # Case 3: bf16 with F not a 128-multiple and B not foldable -> zero-pad
    # path + dtype-aware sublane alignment (sub=16 for bf16).
    B3, F3 = 6, 48
    x3 = jax.random.normal(k4, (B3, F3), dtype=jnp.bfloat16)
    w3 = (jnp.arange(F3, dtype=jnp.float32).reshape(1, F3) / F3 + 0.5).astype(jnp.bfloat16)
    y3 = rescale(x3, w3)
    jax.block_until_ready(y3)
    assert y3.shape == x3.shape
    assert jnp.allclose(y3.astype(jnp.float32), (w3 * x3).astype(jnp.float32),
                        atol=1e-2, rtol=1e-2)

    print("KERNEL_OK")
</pallas_src>

<mosaic_0001>
module attributes {stable_mosaic.version = 11 : i64} {
  func.func @_rescale_kernel(%arg0: i32, %arg1: i32, %arg2: memref<1x128xf32, #tpu.memory_space<vmem>>, %arg3: memref<2x128xf32, #tpu.memory_space<vmem>>, %arg4: memref<2x128xf32, #tpu.memory_space<vmem>>) attributes {dimension_semantics = [#tpu.dimension_semantics<parallel>, #tpu.dimension_semantics<parallel>], iteration_bounds = array<i64: 1, 1>, scalar_prefetch = 0 : i64, scratch_operands = 0 : i64, tpu.core_type = #tpu.core_type<tc>, window_params = [{transform_indices = @transform_0, window_bounds = array<i64: 1, 128>}, {transform_indices = @transform_1, window_bounds = array<i64: 2, 128>}, {transform_indices = @transform_2, window_bounds = array<i64: 2, 128>}]} {
    %c0 = arith.constant 0 : index
    %c0_0 = arith.constant 0 : index
    %0 = vector.load %arg3[%c0, %c0_0] : memref<2x128xf32, #tpu.memory_space<vmem>>, vector<2x128xf32>
    %c0_1 = arith.constant 0 : index
    %c0_2 = arith.constant 0 : index
    %1 = vector.load %arg2[%c0_1, %c0_2] : memref<1x128xf32, #tpu.memory_space<vmem>>, vector<1x128xf32>
    %2 = vector.broadcast %1 : vector<1x128xf32> to vector<2x128xf32>
    %3 = arith.mulf %0, %2 : vector<2x128xf32>
    %c0_3 = arith.constant 0 : index
    %c0_4 = arith.constant 0 : index
    %4 = vector.load %arg4[%c0_3, %c0_4] : memref<2x128xf32, #tpu.memory_space<vmem>>, vector<2x128xf32>
    tpu.vector_store %arg4[%c0_3, %c0_4], %3 {strides = array<i32>} : memref<2x128xf32, #tpu.memory_space<vmem>>, vector<2x128xf32>,
    return
  }
  func.func @transform_0(%arg0: i32, %arg1: i32) -> (i32, i32) {
    %c0_i32 = arith.constant 0 : i32
    %c0_i32_0 = arith.constant 0 : i32
    return %c0_i32, %arg1 : i32, i32
  }
  func.func @transform_1(%arg0: i32, %arg1: i32) -> (i32, i32) {
    %c0_i32 = arith.constant 0 : i32
    return %arg0, %arg1 : i32, i32
  }
  func.func @transform_2(%arg0: i32, %arg1: i32) -> (i32, i32) {
    %c0_i32 = arith.constant 0 : i32
    return %arg0, %arg1 : i32, i32
  }
}

</mosaic_0001>

<bundles_post_ra>
// kernel: tpu_custom_call.1
= control target key start
LH: loop header
LB: loop body
LE: loop exit
PB: predicated region body
PF: predicated region fallthrough
CT: control target
= control target key end

     0   :  { %7 = vsyncpa [#allocation3], 0  ;;  %s159_s0 = inlined_call_operand.hbm [shape: f32[1,128], index: 0, kind: input, shape index: {}]   ;;  %s160_s1 = inlined_call_operand.hbm [shape: f32[2,128], index: 1, kind: input, shape index: {}]   ;;  %s161_s2 = inlined_call_operand.hbm [shape: f32[2,128], index: 2, kind: output, shape index: {}]  }
   0x1   :  { %8 = vsyncpa [#allocation6], 0 }
   0x2   :  { %9 = vsyncpa [#allocation4], 0  ;;  %s132_s9 = smov [#allocation2]   ;;  %s133_s11 = smov [#allocation5]  }
   0x3   :  { %s16_s10 = sshll.u32 %s132_s9, 4  ;;  %s26_s12 = sshll.u32 %s133_s11, 4  ;;  %s17_s10 = int_to_ptr.vmem [resolvable:$true] %s16_s10  ;;  %s27_s12 = int_to_ptr.vmem [resolvable:$true] %s26_s12 }
   0x4   :  { %s74_s13 = scalar_lea.vmem %s17_s10, 16  ;;  %s78_s14 = scalar_lea.vmem %s17_s10, 32 }
   0x5   :  { %p75_p0 = scmp.ne.s32.totalorder %s17_s10, %s74_s13  ;;  %p79_p1 = scmp.lt.s32.totalorder %s17_s10, %s17_s10 }
   0x6   :  { %p80_p2 = scmp.lt.s32.totalorder %s78_s14, %s74_s13 }
   0x8   :  { %p81_p3 = por %p80_p2, %p79_p1 }
   0xa   :  { %p82_p4 = pnand %p81_p3, %p75_p0 }
   0xc   :  { %85 = shalt.err (!%p82_p4)
}
   0xd   :  { %19 = dma.hbm_to_vmem [thread:$0]  %s159_s0, 16, %s17_s10, [#allocation3]  }
   0xe   :  { %s94_s17 = scalar_lea.vmem %s27_s12, 32  ;;  %p99_p6 = scmp.lt.s32.totalorder %s27_s12, %s27_s12 }
   0xf   :  { %p95_p5 = scmp.ne.s32.totalorder %s27_s12, %s94_s17  ;;  %p100_p7 = scmp.lt.s32.totalorder %s94_s17, %s94_s17 }
  0x11   :  { %p101_p8 = por %p100_p7, %p99_p6 }
  0x13   :  { %p102_p9 = pnand %p101_p8, %p95_p5 }
  0x15   :  { %105 = shalt.err (!%p102_p9)
}
  0x16   :  { %29 = dma.hbm_to_vmem [thread:$0]  %s160_s1, 32, %s27_s12, [#allocation6]  }
  0x17   :  { %126 = dma.done.wait [#allocation3], 16  }
  0x18   :  { %127 = vsyncadd [#allocation3], 4294967280 }
  0x19   :  { %128 = dma.done.wait [#allocation6], 32  }
  0x1a   :  { %129 = vsyncadd [#allocation6], 4294967264  ;;  %s134_s20 = smov [#allocation7]   ;;  %v36_v0 = vld [vmem:[#allocation5] sm:$0x3] }
  0x1b   :  { %s52_s21 = sshll.u32 %s134_s20, 4  ;;  %v62_v1 = vld [vmem:[#allocation2] ss:$0 sm:$0xff]  ;;  %s53_s21 = int_to_ptr.vmem [resolvable:$true] %s52_s21 }
  0x1c   :  { %v44_v2 = vmul.f32 %v62_v1, %v36_v0  ;;  %s106_s0 = scalar_lea.vmem %s53_s21, 32  ;;  %p111_p11 = scmp.lt.s32.totalorder %s53_s21, %s53_s21 }
  0x1d   :  { %p107_p10 = scmp.ne.s32.totalorder %s53_s21, %s106_s0  ;;  %p112_p12 = scmp.lt.s32.totalorder %s106_s0, %s106_s0 }
  0x1e   :  { %45 = vst [vmem:[#allocation7] sm:$0x3] %v44_v2 }
  0x1f   :  { %p113_p13 = por %p112_p12, %p111_p11 }
  0x21   :  { %p114_p0 = pnand %p113_p13, %p107_p10 }
  0x23   :  { %117 = shalt.err (!%p114_p0)
}
  0x24   :  { %55 = dma.vmem_to_hbm [thread:$0]  %s53_s21, 32, %s161_s2, [#allocation4]  }
  0x25   :  { %130 = dma.done.wait [#allocation4], 32  }
  0x26   :  { %131 = vsyncadd [#allocation4], 4294967264 }
  0x27   :  { %59 = vsyncpa [#allocation3], 1 }
  0x28   :  { %60 = vsyncpa [#allocation6], 1 }
  0x29   :  { %61 = vsyncpa [#allocation4], 1 }

</bundles_post_ra>
